<compile_context>
chip_gen: v5e
topology: v5e:2x2
jax: 0.10.0
libtpu: 0.0.40
codegen_flags: <defaults>
</compile_context>

<pallas_src>
import functools

import numpy as np
import jax
import jax.numpy as jnp
from jax import lax
from jax.experimental import pallas as pl
from jax.experimental.pallas import tpu as pltpu


# ----------------------------------------------------------------------------
# Combined (bilinear upsample o Haar filter) operators, built once per (H, W).
# ----------------------------------------------------------------------------
def _upsample_matrix(n: int) -> np.ndarray:
    """(2n, n) bilinear x2 upsampling matrix, align_corners=False (PyTorch)."""
    m = np.zeros((2 * n, n), dtype=np.float32)
    for j in range(2 * n):
        src = max(0.5 * (j + 0.5) - 0.5, 0.0)     # half-pixel centers, clamp at 0
        i0 = int(np.floor(src))
        frac = src - i0
        i1 = min(i0 + 1, n - 1)
        m[j, i0] += 1.0 - frac
        m[j, i1] += frac
    return m


def _down_matrix(n: int, sign: float, scale: float) -> np.ndarray:
    """(n//2, n) stride-2 filter matrix: row i = scale * (e_{2i} + sign * e_{2i+1})."""
    m = np.zeros((n // 2, n), dtype=np.float32)
    for i in range(n // 2):
        m[i, 2 * i] = scale
        m[i, 2 * i + 1] = sign * scale
    return m


@functools.lru_cache(maxsize=None)
def make_haar_operators(H: int, W: int):
    """Returns Acat (2H, H) = [A+; A-] and BTcat (W, 2W) = [B+^T | B-^T] on device."""
    UH = _upsample_matrix(H // 2)                 # (H, H//2)
    UW = _upsample_matrix(W // 2)                 # (W, W//2)
    a_plus = UH @ _down_matrix(H, +1.0, 0.5)      # (H, H)
    a_minus = UH @ _down_matrix(H, -1.0, 0.5)
    b_plus = UW @ _down_matrix(W, +1.0, 1.0)      # (W, W)
    b_minus = UW @ _down_matrix(W, -1.0, 1.0)
    Acat = np.concatenate([a_plus, a_minus], axis=0)          # (2H, H)
    BTcat = np.concatenate([b_plus.T, b_minus.T], axis=1)     # (W, 2W)
    return jnp.asarray(Acat), jnp.asarray(BTcat)


# ----------------------------------------------------------------------------
# Kernels.
# ----------------------------------------------------------------------------
def _store_subbands(o_ref, n, z):
    """z: (2H, 2W) quadrant slab of plane n -> 4 sub-band planes of o_ref."""
    H, W = o_ref.shape[2], o_ref.shape[3]
    o_ref[n, 0] = z[:H, :W].astype(o_ref.dtype)   # approx (A+, B+)
    o_ref[n, 1] = z[H:, :W].astype(o_ref.dtype)   # horiz  (A-, B+)
    o_ref[n, 2] = z[:H, W:].astype(o_ref.dtype)   # vert   (A+, B-)
    o_ref[n, 3] = z[H:, W:].astype(o_ref.dtype)   # diag   (A-, B-)


def haar_kernel_batched(x_ref, a_ref, bt_ref, o_ref, y_ref):
    """Small planes: stage 1 batched over all P planes (one lane-tall MXU matmul)."""
    P, H, W = x_ref.shape
    x_flat = x_ref[...].reshape(P * H, W)                           # leading-dim merge
    y = jnp.dot(x_flat, bt_ref[...], preferred_element_type=jnp.float32)
    y_ref[...] = y.reshape(P, H, 2 * W)
    a = a_ref[...]                                                  # hoisted (2H, H)

    def per_plane(n, carry):
        z = jnp.dot(a, y_ref[n], preferred_element_type=jnp.float32)   # (2H, 2W)
        _store_subbands(o_ref, n, z)
        return carry

    lax.fori_loop(0, P, per_plane, 0, unroll=min(P, 4))


def haar_kernel_fused(x_ref, a_ref, bt_ref, o_ref):
    """Large planes (H >= MXU tile): both stages per plane, no stage-1 scratch."""
    P = x_ref.shape[0]
    a = a_ref[...]
    bt = bt_ref[...]

    def per_plane(n, carry):
        y = jnp.dot(x_ref[n], bt, preferred_element_type=jnp.float32)  # (H, 2W)
        z = jnp.dot(a, y, preferred_element_type=jnp.float32)          # (2H, 2W)
        _store_subbands(o_ref, n, z)
        return carry

    lax.fori_loop(0, P, per_plane, 0, unroll=min(P, 2))


# ----------------------------------------------------------------------------
# Wrapper.
# ----------------------------------------------------------------------------
_FUSE_MIN_H = 128   # contraction dim >= MXU tile: per-plane stage 1 already efficient


def _vmem_capacity_bytes() -> int:
    try:
        return int(pltpu.get_tpu_info().vmem_capacity_bytes)
    except Exception:                 # info query only; kernel errors are not masked
        return 64 << 20               # conservative default (v7x per-TensorCore VMEM)


def haar_wavelet_transform(x: jax.Array, in_channels: int = 3, *,
                           compute_dtype=None) -> jax.Array:
    """x: (B, C, H, W), C == in_channels, H and W even.  Returns (B, 4*C, H, W)."""
    B, C, H, W = x.shape
    assert C == in_channels and H % 2 == 0 and W % 2 == 0
    N = B * C
    fuse = H >= _FUSE_MIN_H

    cdt = jnp.dtype(compute_dtype) if compute_dtype is not None else jnp.dtype(x.dtype)
    Acat, BTcat = make_haar_operators(H, W)
    if Acat.dtype != cdt:
        Acat, BTcat = Acat.astype(cdt), BTcat.astype(cdt)
    x_planes = x.reshape(N, H, W)                      # contiguous, free reshape
    if x_planes.dtype != cdt:
        x_planes = x_planes.astype(cdt)

    # ---- generation-aware VMEM budget -> planes per grid step P -----------------
    ex = cdt.itemsize                                  # x / operator element size
    eo = jnp.dtype(x.dtype).itemsize                   # output element size
    vmem_cap = _vmem_capacity_bytes()                  # 128 MiB v5e/v6e, 64 MiB v7x
    plane_budget = int(vmem_cap * 0.60)                # ~76 MiB / ~38 MiB
    vmem_ceiling = int(vmem_cap * 0.85)                # ~108 MiB / ~54 MiB
    # x block (double-buffered) + out block (4 sub-bands, double-buffered)
    # [+ stage-1 scratch and its store transient on the non-fused path].
    per_plane = (2 * ex + 8 * eo + (0 if fuse else 16)) * H * W
    op_bytes = 2 * ex * (2 * H * H + 2 * W * W)        # both operators, dbl-buffered
    live_bytes = 24 * H * W                            # one live y (H,2W) + z (2H,2W)
    p_cap = max(1, (plane_budget - op_bytes - live_bytes) // per_plane)
    p_cap = int(min(p_cap, 1024, N))

    # >= 2 grid steps whenever there are >= 2 planes so both v7x TensorCores get
    # work (the "parallel" axis is sharded across cores).  P need not divide N:
    # the ragged tail is zero-padded, which is far cheaper than shrinking P to a
    # divisor of an awkward B*C.
    min_steps = 2 if N >= 2 else 1
    num_steps = max(min_steps, pl.cdiv(N, p_cap))
    P = pl.cdiv(N, num_steps)
    N_pad = num_steps * P
    if N_pad != N:
        x_planes = jnp.pad(x_planes, ((0, N_pad - N), (0, 0), (0, 0)))

    needed = P * per_plane + op_bytes + live_bytes
    vmem_limit = int(min(max(int(needed * 1.4) + (2 << 20), 16 << 20), vmem_ceiling))

    if fuse:
        kernel = haar_kernel_fused
        scratch_shapes = []
    else:
        kernel = haar_kernel_batched
        scratch_shapes = [pltpu.VMEM((P, H, 2 * W), jnp.float32)]

    grid_spec = pltpu.PrefetchScalarGridSpec(
        num_scalar_prefetch=0,
        grid=(num_steps,),
        in_specs=[
            pl.BlockSpec((P, H, W), lambda i: (i, 0, 0)),
            # Grid-invariant operators: constant block index -> DMA'd only once.
            pl.BlockSpec((2 * H, H), lambda i: (0, 0)),
            pl.BlockSpec((W, 2 * W), lambda i: (0, 0)),
        ],
        out_specs=pl.BlockSpec((P, 4, H, W), lambda i: (i, 0, 0, 0)),
        scratch_shapes=scratch_shapes,
    )
    out = pl.pallas_call(
        kernel,
        out_shape=jax.ShapeDtypeStruct((N_pad, 4, H, W), x.dtype),
        grid_spec=grid_spec,
        compiler_params=pltpu.CompilerParams(
            dimension_semantics=("parallel",),
            vmem_limit_bytes=vmem_limit),
    )(x_planes, Acat, BTcat)

    if N_pad != N:
        out = out[:N]
    # (B*C, 4, H, W) -> (B, 4*C, H, W): contiguous merge; channel order c*4 + filter
    # matches PyTorch's grouped-conv weight layout (kernels repeated per channel).
    return out.reshape(B, 4 * C, H, W)


# ----------------------------------------------------------------------------
# Pure NumPy reference mirroring the PyTorch semantics (sanity check).
# ----------------------------------------------------------------------------
def reference(x: np.ndarray) -> np.ndarray:
    x = np.asarray(x, np.float32)
    Bn, C, H, W = x.shape
    a = x[:, :, 0::2, 0::2]
    b = x[:, :, 0::2, 1::2]
    c = x[:, :, 1::2, 0::2]
    d = x[:, :, 1::2, 1::2]
    conv = np.stack([0.5 * (a + b + c + d), 0.5 * (a + b - c - d),
                     0.5 * (a - b + c - d), 0.5 * (a - b - c + d)],
                    axis=2)                               # (B, C, 4, H/2, W/2)
    conv = conv.reshape(Bn, C * 4, H // 2, W // 2)
    UH = _upsample_matrix(H // 2)                         # (H, H/2)
    UW = _upsample_matrix(W // 2)                         # (W, W/2)
    up = np.matmul(UH, conv)                              # (B, 4C, H, W/2)
    return np.matmul(up, UW.T)                            # (B, 4C, H, W)


if __name__ == "__main__":
    k1, k2, k3 = jax.random.split(jax.random.PRNGKey(0), 3)

    # 1) Small planes: batched-stage-1 path, 2-step grid, no padding (N=6 -> P=3).
    x1 = jax.random.normal(k1, (2, 3, 16, 16), dtype=jnp.float32)
    o1 = jax.block_until_ready(haar_wavelet_transform(x1, in_channels=3))
    assert o1.shape == (2, 12, 16, 16), o1.shape
    np.testing.assert_allclose(np.asarray(o1), reference(np.asarray(x1)),
                               rtol=5e-4, atol=5e-4)

    # 2) Awkward plane count: N=3 -> zero-padded to 2 steps x P=2 planes.
    x2 = jax.random.normal(k2, (1, 3, 16, 16), dtype=jnp.float32)
    o2 = jax.block_until_ready(haar_wavelet_transform(x2, in_channels=3))
    assert o2.shape == (1, 12, 16, 16), o2.shape
    np.testing.assert_allclose(np.asarray(o2), reference(np.asarray(x2)),
                               rtol=5e-4, atol=5e-4)

    # 3) Large planes: fused per-plane path (no stage-1 scratch).
    x3 = jax.random.normal(k3, (1, 2, 128, 128), dtype=jnp.float32)
    o3 = jax.block_until_ready(haar_wavelet_transform(x3, in_channels=2))
    assert o3.shape == (1, 8, 128, 128), o3.shape
    np.testing.assert_allclose(np.asarray(o3), reference(np.asarray(x3)),
                               rtol=5e-4, atol=5e-4)

    print("KERNEL_OK")
</pallas_src>

<mosaic_0001>
module attributes {stable_mosaic.version = 11 : i64} {
  func.func @haar_kernel_batched(%arg0: i32, %arg1: memref<3x16x16xf32, #tpu.memory_space<vmem>>, %arg2: memref<32x16xf32, #tpu.memory_space<vmem>>, %arg3: memref<16x32xf32, #tpu.memory_space<vmem>>, %arg4: memref<3x4x16x16xf32, #tpu.memory_space<vmem>>, %arg5: memref<3x16x32xf32, #tpu.memory_space<vmem>>) attributes {dimension_semantics = [#tpu.dimension_semantics<parallel>], iteration_bounds = array<i64: 2>, scalar_prefetch = 0 : i64, scratch_operands = 1 : i64, tpu.core_type = #tpu.core_type<tc>, window_params = [{transform_indices = @transform_0, window_bounds = array<i64: 3, 16, 16>}, {pipeline_mode = #tpu.pipeline_mode<synchronous>, transform_indices = @transform_1, window_bounds = array<i64: 32, 16>}, {pipeline_mode = #tpu.pipeline_mode<synchronous>, transform_indices = @transform_2, window_bounds = array<i64: 16, 32>}, {transform_indices = @transform_3, window_bounds = array<i64: 3, 4, 16, 16>}]} {
    %c0 = arith.constant 0 : index
    %c0_0 = arith.constant 0 : index
    %c0_1 = arith.constant 0 : index
    %0 = vector.load %arg1[%c0, %c0_0, %c0_1] : memref<3x16x16xf32, #tpu.memory_space<vmem>>, vector<3x16x16xf32>
    %1 = vector.shape_cast %0 : vector<3x16x16xf32> to vector<48x16xf32>
    %c0_2 = arith.constant 0 : index
    %c0_3 = arith.constant 0 : index
    %2 = vector.load %arg3[%c0_2, %c0_3] : memref<16x32xf32, #tpu.memory_space<vmem>>, vector<16x32xf32>
    %cst = arith.constant dense<0.000000e+00> : vector<48x32xf32>
    %3 = tpu.matmul %1, %2, %cst {dimension_numbers = #tpu.dot_dimension_numbers<[1], [0], [0], [1], [0, 0, 1, 1], [], []>} : vector<48x16xf32>, vector<16x32xf32>, vector<48x32xf32> -> vector<48x32xf32>
    %4 = vector.shape_cast %3 : vector<48x32xf32> to vector<3x16x32xf32>
    %c0_4 = arith.constant 0 : index
    %c0_5 = arith.constant 0 : index
    %c0_6 = arith.constant 0 : index
    %5 = vector.load %arg5[%c0_4, %c0_5, %c0_6] : memref<3x16x32xf32, #tpu.memory_space<vmem>>, vector<3x16x32xf32>
    tpu.vector_store %arg5[%c0_4, %c0_5, %c0_6], %4 {strides = array<i32>} : memref<3x16x32xf32, #tpu.memory_space<vmem>>, vector<3x16x32xf32>,
    %c0_7 = arith.constant 0 : index
    %c0_8 = arith.constant 0 : index
    %6 = vector.load %arg2[%c0_7, %c0_8] : memref<32x16xf32, #tpu.memory_space<vmem>>, vector<32x16xf32>
    %c0_i32 = arith.constant 0 : i32
    %7 = arith.index_cast %c0_i32 : i32 to index
    %c0_9 = arith.constant 0 : index
    %c0_10 = arith.constant 0 : index
    %8 = vector.load %arg5[%7, %c0_9, %c0_10] : memref<3x16x32xf32, #tpu.memory_space<vmem>>, vector<1x16x32xf32>
    %9 = vector.shape_cast %8 : vector<1x16x32xf32> to vector<16x32xf32>
    %cst_11 = arith.constant dense<0.000000e+00> : vector<32x32xf32>
    %10 = tpu.matmul %6, %9, %cst_11 {dimension_numbers = #tpu.dot_dimension_numbers<[1], [0], [0], [1], [0, 0, 1, 1], [], []>} : vector<32x16xf32>, vector<16x32xf32>, vector<32x32xf32> -> vector<32x32xf32>
    %11 = vector.extract_strided_slice %10 {offsets = [0, 0], sizes = [16, 16], strides = [1, 1]} : vector<32x32xf32> to vector<16x16xf32>
    %12 = arith.index_cast %c0_i32 : i32 to index
    %c0_12 = arith.constant 0 : index
    %c0_13 = arith.constant 0 : index
    %c0_14 = arith.constant 0 : index
    %13 = vector.load %arg4[%12, %c0_12, %c0_13, %c0_14] : memref<3x4x16x16xf32, #tpu.memory_space<vmem>>, vector<1x1x16x16xf32>
    %14 = vector.shape_cast %13 : vector<1x1x16x16xf32> to vector<16x16xf32>
    %15 = vector.shape_cast %11 : vector<16x16xf32> to vector<1x1x16x16xf32>
    tpu.vector_store %arg4[%12, %c0_12, %c0_13, %c0_14], %15 {strides = array<i32>} : memref<3x4x16x16xf32, #tpu.memory_space<vmem>>, vector<1x1x16x16xf32>,
    %16 = vector.extract_strided_slice %10 {offsets = [16, 0], sizes = [16, 16], strides = [1, 1]} : vector<32x32xf32> to vector<16x16xf32>
    %17 = arith.index_cast %c0_i32 : i32 to index
    %c1 = arith.constant 1 : index
    %c0_15 = arith.constant 0 : index
    %c0_16 = arith.constant 0 : index
    %18 = vector.load %arg4[%17, %c1, %c0_15, %c0_16] : memref<3x4x16x16xf32, #tpu.memory_space<vmem>>, vector<1x1x16x16xf32>
    %19 = vector.shape_cast %18 : vector<1x1x16x16xf32> to vector<16x16xf32>
    %20 = vector.shape_cast %16 : vector<16x16xf32> to vector<1x1x16x16xf32>
    tpu.vector_store %arg4[%17, %c1, %c0_15, %c0_16], %20 {strides = array<i32>} : memref<3x4x16x16xf32, #tpu.memory_space<vmem>>, vector<1x1x16x16xf32>,
    %21 = vector.extract_strided_slice %10 {offsets = [0, 16], sizes = [16, 16], strides = [1, 1]} : vector<32x32xf32> to vector<16x16xf32>
    %22 = arith.index_cast %c0_i32 : i32 to index
    %c2 = arith.constant 2 : index
    %c0_17 = arith.constant 0 : index
    %c0_18 = arith.constant 0 : index
    %23 = vector.load %arg4[%22, %c2, %c0_17, %c0_18] : memref<3x4x16x16xf32, #tpu.memory_space<vmem>>, vector<1x1x16x16xf32>
    %24 = vector.shape_cast %23 : vector<1x1x16x16xf32> to vector<16x16xf32>
    %25 = vector.shape_cast %21 : vector<16x16xf32> to vector<1x1x16x16xf32>
    tpu.vector_store %arg4[%22, %c2, %c0_17, %c0_18], %25 {strides = array<i32>} : memref<3x4x16x16xf32, #tpu.memory_space<vmem>>, vector<1x1x16x16xf32>,
    %26 = vector.extract_strided_slice %10 {offsets = [16, 16], sizes = [16, 16], strides = [1, 1]} : vector<32x32xf32> to vector<16x16xf32>
    %27 = arith.index_cast %c0_i32 : i32 to index
    %c3 = arith.constant 3 : index
    %c0_19 = arith.constant 0 : index
    %c0_20 = arith.constant 0 : index
    %28 = vector.load %arg4[%27, %c3, %c0_19, %c0_20] : memref<3x4x16x16xf32, #tpu.memory_space<vmem>>, vector<1x1x16x16xf32>
    %29 = vector.shape_cast %28 : vector<1x1x16x16xf32> to vector<16x16xf32>
    %30 = vector.shape_cast %26 : vector<16x16xf32> to vector<1x1x16x16xf32>
    tpu.vector_store %arg4[%27, %c3, %c0_19, %c0_20], %30 {strides = array<i32>} : memref<3x4x16x16xf32, #tpu.memory_space<vmem>>, vector<1x1x16x16xf32>,
    %c1_i32 = arith.constant 1 : i32
    %31 = arith.index_cast %c1_i32 : i32 to index
    %c0_21 = arith.constant 0 : index
    %c0_22 = arith.constant 0 : index
    %32 = vector.load %arg5[%31, %c0_21, %c0_22] : memref<3x16x32xf32, #tpu.memory_space<vmem>>, vector<1x16x32xf32>
    %33 = vector.shape_cast %32 : vector<1x16x32xf32> to vector<16x32xf32>
    %cst_23 = arith.constant dense<0.000000e+00> : vector<32x32xf32>
    %34 = tpu.matmul %6, %33, %cst_23 {dimension_numbers = #tpu.dot_dimension_numbers<[1], [0], [0], [1], [0, 0, 1, 1], [], []>} : vector<32x16xf32>, vector<16x32xf32>, vector<32x32xf32> -> vector<32x32xf32>
    %35 = vector.extract_strided_slice %34 {offsets = [0, 0], sizes = [16, 16], strides = [1, 1]} : vector<32x32xf32> to vector<16x16xf32>
    %36 = arith.index_cast %c1_i32 : i32 to index
    %c0_24 = arith.constant 0 : index
    %c0_25 = arith.constant 0 : index
    %c0_26 = arith.constant 0 : index
    %37 = vector.load %arg4[%36, %c0_24, %c0_25, %c0_26] : memref<3x4x16x16xf32, #tpu.memory_space<vmem>>, vector<1x1x16x16xf32>
    %38 = vector.shape_cast %37 : vector<1x1x16x16xf32> to vector<16x16xf32>
    %39 = vector.shape_cast %35 : vector<16x16xf32> to vector<1x1x16x16xf32>
    tpu.vector_store %arg4[%36, %c0_24, %c0_25, %c0_26], %39 {strides = array<i32>} : memref<3x4x16x16xf32, #tpu.memory_space<vmem>>, vector<1x1x16x16xf32>,
    %40 = vector.extract_strided_slice %34 {offsets = [16, 0], sizes = [16, 16], strides = [1, 1]} : vector<32x32xf32> to vector<16x16xf32>
    %41 = arith.index_cast %c1_i32 : i32 to index
    %c1_27 = arith.constant 1 : index
    %c0_28 = arith.constant 0 : index
    %c0_29 = arith.constant 0 : index
    %42 = vector.load %arg4[%41, %c1_27, %c0_28, %c0_29] : memref<3x4x16x16xf32, #tpu.memory_space<vmem>>, vector<1x1x16x16xf32>
    %43 = vector.shape_cast %42 : vector<1x1x16x16xf32> to vector<16x16xf32>
    %44 = vector.shape_cast %40 : vector<16x16xf32> to vector<1x1x16x16xf32>
    tpu.vector_store %arg4[%41, %c1_27, %c0_28, %c0_29], %44 {strides = array<i32>} : memref<3x4x16x16xf32, #tpu.memory_space<vmem>>, vector<1x1x16x16xf32>,
    %45 = vector.extract_strided_slice %34 {offsets = [0, 16], sizes = [16, 16], strides = [1, 1]} : vector<32x32xf32> to vector<16x16xf32>
    %46 = arith.index_cast %c1_i32 : i32 to index
    %c2_30 = arith.constant 2 : index
    %c0_31 = arith.constant 0 : index
    %c0_32 = arith.constant 0 : index
    %47 = vector.load %arg4[%46, %c2_30, %c0_31, %c0_32] : memref<3x4x16x16xf32, #tpu.memory_space<vmem>>, vector<1x1x16x16xf32>
    %48 = vector.shape_cast %47 : vector<1x1x16x16xf32> to vector<16x16xf32>
    %49 = vector.shape_cast %45 : vector<16x16xf32> to vector<1x1x16x16xf32>
    tpu.vector_store %arg4[%46, %c2_30, %c0_31, %c0_32], %49 {strides = array<i32>} : memref<3x4x16x16xf32, #tpu.memory_space<vmem>>, vector<1x1x16x16xf32>,
    %50 = vector.extract_strided_slice %34 {offsets = [16, 16], sizes = [16, 16], strides = [1, 1]} : vector<32x32xf32> to vector<16x16xf32>
    %51 = arith.index_cast %c1_i32 : i32 to index
    %c3_33 = arith.constant 3 : index
    %c0_34 = arith.constant 0 : index
    %c0_35 = arith.constant 0 : index
    %52 = vector.load %arg4[%51, %c3_33, %c0_34, %c0_35] : memref<3x4x16x16xf32, #tpu.memory_space<vmem>>, vector<1x1x16x16xf32>
    %53 = vector.shape_cast %52 : vector<1x1x16x16xf32> to vector<16x16xf32>
    %54 = vector.shape_cast %50 : vector<16x16xf32> to vector<1x1x16x16xf32>
    tpu.vector_store %arg4[%51, %c3_33, %c0_34, %c0_35], %54 {strides = array<i32>} : memref<3x4x16x16xf32, #tpu.memory_space<vmem>>, vector<1x1x16x16xf32>,
    %c2_i32 = arith.constant 2 : i32
    %55 = arith.index_cast %c2_i32 : i32 to index
    %c0_36 = arith.constant 0 : index
    %c0_37 = arith.constant 0 : index
    %56 = vector.load %arg5[%55, %c0_36, %c0_37] : memref<3x16x32xf32, #tpu.memory_space<vmem>>, vector<1x16x32xf32>
    %57 = vector.shape_cast %56 : vector<1x16x32xf32> to vector<16x32xf32>
    %cst_38 = arith.constant dense<0.000000e+00> : vector<32x32xf32>
    %58 = tpu.matmul %6, %57, %cst_38 {dimension_numbers = #tpu.dot_dimension_numbers<[1], [0], [0], [1], [0, 0, 1, 1], [], []>} : vector<32x16xf32>, vector<16x32xf32>, vector<32x32xf32> -> vector<32x32xf32>
    %59 = vector.extract_strided_slice %58 {offsets = [0, 0], sizes = [16, 16], strides = [1, 1]} : vector<32x32xf32> to vector<16x16xf32>
    %60 = arith.index_cast %c2_i32 : i32 to index
    %c0_39 = arith.constant 0 : index
    %c0_40 = arith.constant 0 : index
    %c0_41 = arith.constant 0 : index
    %61 = vector.load %arg4[%60, %c0_39, %c0_40, %c0_41] : memref<3x4x16x16xf32, #tpu.memory_space<vmem>>, vector<1x1x16x16xf32>
    %62 = vector.shape_cast %61 : vector<1x1x16x16xf32> to vector<16x16xf32>
    %63 = vector.shape_cast %59 : vector<16x16xf32> to vector<1x1x16x16xf32>
    tpu.vector_store %arg4[%60, %c0_39, %c0_40, %c0_41], %63 {strides = array<i32>} : memref<3x4x16x16xf32, #tpu.memory_space<vmem>>, vector<1x1x16x16xf32>,
    %64 = vector.extract_strided_slice %58 {offsets = [16, 0], sizes = [16, 16], strides = [1, 1]} : vector<32x32xf32> to vector<16x16xf32>
    %65 = arith.index_cast %c2_i32 : i32 to index
    %c1_42 = arith.constant 1 : index
    %c0_43 = arith.constant 0 : index
    %c0_44 = arith.constant 0 : index
    %66 = vector.load %arg4[%65, %c1_42, %c0_43, %c0_44] : memref<3x4x16x16xf32, #tpu.memory_space<vmem>>, vector<1x1x16x16xf32>
    %67 = vector.shape_cast %66 : vector<1x1x16x16xf32> to vector<16x16xf32>
    %68 = vector.shape_cast %64 : vector<16x16xf32> to vector<1x1x16x16xf32>
    tpu.vector_store %arg4[%65, %c1_42, %c0_43, %c0_44], %68 {strides = array<i32>} : memref<3x4x16x16xf32, #tpu.memory_space<vmem>>, vector<1x1x16x16xf32>,
    %69 = vector.extract_strided_slice %58 {offsets = [0, 16], sizes = [16, 16], strides = [1, 1]} : vector<32x32xf32> to vector<16x16xf32>
    %70 = arith.index_cast %c2_i32 : i32 to index
    %c2_45 = arith.constant 2 : index
    %c0_46 = arith.constant 0 : index
    %c0_47 = arith.constant 0 : index
    %71 = vector.load %arg4[%70, %c2_45, %c0_46, %c0_47] : memref<3x4x16x16xf32, #tpu.memory_space<vmem>>, vector<1x1x16x16xf32>
    %72 = vector.shape_cast %71 : vector<1x1x16x16xf32> to vector<16x16xf32>
    %73 = vector.shape_cast %69 : vector<16x16xf32> to vector<1x1x16x16xf32>
    tpu.vector_store %arg4[%70, %c2_45, %c0_46, %c0_47], %73 {strides = array<i32>} : memref<3x4x16x16xf32, #tpu.memory_space<vmem>>, vector<1x1x16x16xf32>,
    %74 = vector.extract_strided_slice %58 {offsets = [16, 16], sizes = [16, 16], strides = [1, 1]} : vector<32x32xf32> to vector<16x16xf32>
    %75 = arith.index_cast %c2_i32 : i32 to index
    %c3_48 = arith.constant 3 : index
    %c0_49 = arith.constant 0 : index
    %c0_50 = arith.constant 0 : index
    %76 = vector.load %arg4[%75, %c3_48, %c0_49, %c0_50] : memref<3x4x16x16xf32, #tpu.memory_space<vmem>>, vector<1x1x16x16xf32>
    %77 = vector.shape_cast %76 : vector<1x1x16x16xf32> to vector<16x16xf32>
    %78 = vector.shape_cast %74 : vector<16x16xf32> to vector<1x1x16x16xf32>
    tpu.vector_store %arg4[%75, %c3_48, %c0_49, %c0_50], %78 {strides = array<i32>} : memref<3x4x16x16xf32, #tpu.memory_space<vmem>>, vector<1x1x16x16xf32>,
    %c3_i32 = arith.constant 3 : i32
    return
  }
  func.func @transform_0(%arg0: i32) -> (i32, i32, i32) {
    %c0_i32 = arith.constant 0 : i32
    %c0_i32_0 = arith.constant 0 : i32
    %c0_i32_1 = arith.constant 0 : i32
    return %arg0, %c0_i32, %c0_i32_0 : i32, i32, i32
  }
  func.func @transform_1(%arg0: i32) -> (i32, i32) {
    %c0_i32 = arith.constant 0 : i32
    %c0_i32_0 = arith.constant 0 : i32
    %c0_i32_1 = arith.constant 0 : i32
    return %c0_i32, %c0_i32_0 : i32, i32
  }
  func.func @transform_2(%arg0: i32) -> (i32, i32) {
    %c0_i32 = arith.constant 0 : i32
    %c0_i32_0 = arith.constant 0 : i32
    %c0_i32_1 = arith.constant 0 : i32
    return %c0_i32, %c0_i32_0 : i32, i32
  }
  func.func @transform_3(%arg0: i32) -> (i32, i32, i32, i32) {
    %c0_i32 = arith.constant 0 : i32
    %c0_i32_0 = arith.constant 0 : i32
    %c0_i32_1 = arith.constant 0 : i32
    %c0_i32_2 = arith.constant 0 : i32
    return %arg0, %c0_i32, %c0_i32_0, %c0_i32_1 : i32, i32, i32, i32
  }
}

</mosaic_0001>

<bundles_post_ra>
// kernel: tpu_custom_call.1
= control target key start
LH: loop header
LB: loop body
LE: loop exit
PB: predicated region body
PF: predicated region fallthrough
CT: control target
= control target key end

     0   :  { %8 = vsyncpa [#allocation4], 0  ;;  %s1005_s0 = inlined_call_operand.hbm [shape: f32[6,16,16], index: 0, kind: input, shape index: {}]   ;;  %s1006_s1 = inlined_call_operand.vmem [shape: f32[32,16], index: 1, kind: input, shape index: {}]   ;;  %s1007_s2 = inlined_call_operand.vmem [shape: f32[16,32], index: 2, kind: input, shape index: {}]   ;;  %s1008_s3 = inlined_call_operand.hbm [shape: f32[6,4,16,16], index: 3, kind: output, shape index: {}]  }
   0x1   :  { %10 = vsyncpa [#allocation4 + $0x1], 0 }
   0x2   :  { %11 = vsyncpa [#allocation5], 0 }
   0x3   :  { %13 = vsyncpa [#allocation5 + $0x1], 0  ;;  %s782_s12 = smov 0   ;;  %s784_s13 = smov 0  }
   0x4   :  { %s786_s14 = smov 0   ;;  %s788_s15 = smov 0  }
   0x5 LB: > { %s803_s16 = sadd.s32 4294967295, %s755_s15   ;;  %s547_s17 = sadd.s32 4294967294, %s755_s15   ;;  %s755_s15 = sphi %s788_s15, %s1016_s15   ;;  %s751_s14 = sphi %s786_s14, %s1015_s14   ;;  %s747_s13 = sphi %s784_s13, %s1014_s13   ;;  %s743_s12 = sphi %s782_s12, %s1013_s12  }
   0x6   : > { %s807_s18 = sadd.s32 1, %s755_s15   ;;  %s26_s19 = sadd.s32 1, %s751_s14 }
   0x7   : > { %s23_s20 = ssub.s32 %s755_s15, %s807_s18  ;;  %p33_p0 = scmp.ne.s32.totalorder %s751_s14, %s747_s13 }
   0x8   : > { %p24_p1 = scmp.eq.s32.totalorder %s23_s20, 0  ;;  %p34_p2 = scmp.eq.s32.totalorder %s755_s15, 0 }
   0x9   : > { %p39_p3 = scmp.ne.s32.totalorder %s747_s13, %s743_s12  ;;  %p40_p4 = scmp.eq.s32.totalorder %s803_s16, 0 }
   0xa   : > { %s819_s21 = scalar_select %p24_p1, %s751_s14, %s26_s19  }
   0xb   : > { %p35_p5 = por %p34_p2, %p33_p0  ;;  %p821_p6 = por %p40_p4, %p39_p3 }
   0xc   : > { %p105_p7 = scmp.eq.s32.totalorder %s803_s16, 1  ;;  %p111_p8 = scmp.eq.s32.totalorder %s547_s17, 1 }
   0xd   : > { %p549_p9 = scmp.ge.s32.totalorder %s755_s15, 2  ;;  %p620_p10 = scmp.lt.s32.totalorder %s755_s15, 2 }
   0xe   : > { %p828_p11 = por %p105_p7, %p33_p0  ;;  %p832_p12 = por %p111_p8, %p39_p3 }
   0xf   : > { %s137_s25 = sand.u32 1, %s751_s14   ;;  %s601_s26 = smul.u32 48, %s755_s15 }
  0x10   : > { %s605_s27 = smul.u32 48, %s137_s25  ;;  %p841_p13 = pnand %p620_p10, %p35_p5 }
  0x11   : > { %s147_s30 = scalar_lea.hbm %s1005_s0, %s601_s26  ;;  %s138_s8 = scalar_lea.sflag [#allocation4], %s137_s25 }
  0x12   : > { %s148_s5 = sshll.u32 %s147_s30, 4  ;;  %s141_s6 = scalar_lea.vmem [#allocation3], %s605_s27  ;;  %s149_s5 = int_to_ptr.hbm [resolvable:$true] %s148_s5 }
  0x13   : > { %s150_s7 = sshll.u32 %s141_s6, 4  ;;  %s659_s9 = sshra.s32 %s149_s5, 4  ;;  %s151_s7 = int_to_ptr.vmem [resolvable:$true] %s150_s7  ;;  %s660_s9 = int_to_ptr.hbm [resolvable:$true] %s659_s9 }
  0x14   : > { %s661_s10 = scalar_lea.hbm %s660_s9, 48  ;;  %p663_p1 = pneg %p841_p13 }
  0x15   : > { %p662_p0 = scmp.ne.s32.totalorder %s660_s9, %s661_s10  ;;  %s666_s19 = scalar_lea.hbm %s1005_s0, 96 }
  0x16   : > { %p667_p4 = scmp.lt.s32.totalorder %s660_s9, %s1005_s0  ;;  %p668_p5 = scmp.lt.s32.totalorder %s666_s19, %s661_s10 }
  0x17   : > { %p664_p2 = pnand %p663_p1, %p662_p0 }
  0x18   : > { %p669_p7 = por %p668_p5, %p667_p4 }
  0x19   : > { %p665_p3 = pneg %p664_p2 }
  0x1b   : > { %p670_p8 = pnand %p669_p7, %p665_p3 }
  0x1d   : > { %673 = shalt.err (!%p670_p8)
}
  0x1e   : > { %s757_s25 = smov 128   ;;  %s758_s27 = smov 8  }
  0x1f   : > { %615 = dma.hbm_to_vmem [thread:$0]  (!%p841_p13), %s149_s5, 768, %s151_s7, %s138_s8, %s757_s25, %s757_s25, %s758_s27  }
  0x20   : > { %p552_p10 = scmp.ge.s32.totalorder %s755_s15, 1  ;;  %p158_p0 = scmp.lt.s32.totalorder %s755_s15, 3 }
  0x22   : > { %p159_p1 = pnand %p552_p10, %p158_p0 }
  0x23   : > { %s858_s28 = sand.u32 (!%p159_p1), 1, %s747_s13  }
  0x24   : > { %162 = sbr.rel (%p159_p1) target bundleno = 490 (0x1ea), region = 32  ;;  %s165_s30 = scalar_lea.sflag (!%p159_p1), [#allocation4], %s858_s28 }
  0x25   : > { %s606_s29 = smul.u32 (!%p159_p1), 48, %s858_s28 }
  0x27   : > { %s168_s6 = scalar_lea.vmem (!%p159_p1), [#allocation3], %s606_s29 }
  0x29   : > { %734 = dma.done.wait (%p821_p6), %s165_s30, 768  }
  0x2a   : > { %736 = vsyncadd (%p821_p6), %s165_s30, 4294966528  ;;  %v201_v0 = vld [vmem:[%s1007_s2 + $0x8] sm:$0xff]  ;;  %v200_v1 = vld [vmem:[%s1007_s2] sm:$0xff]  ;;  %vm202_vm0 = vcmask 130048   ;;  %vm256_vm1 = vcmask 261120   ;;  %s607_s25 = smul.u32 192, %s858_s28 }
  0x2b   : > { %235 = vmatpush.msra.mxu0 %v201_v0  ;;  %v194_v2 = vld [vmem:[%s168_s6] sm:$0xff]  ;;  %603 = vmatpush.msra.mxu1 %v201_v0  ;;  %v199_v3 = vld [vmem:[%s168_s6 + $0x28] sm:$0xff]  ;;  %v196_v5 = vld [vmem:[%s168_s6 + $0x10] sm:$0xff]  ;;  %s759_s29 = smov 112   ;;  %s602_s30 = smul.u32 192, %s803_s16 }
  0x2c   : > { %v195_v4 = vld [vmem:[%s168_s6 + $0x8] sm:$0xff]  ;;  %v197_v6 = vld [vmem:[%s168_s6 + $0x18] sm:$0xff]  ;;  %v198_v7 = vld [vmem:[%s168_s6 + $0x20] sm:$0xff]  ;;  %s909_s27 = scalar_lea.vmem [#allocation6], %s607_s25  ;;  %s458_s22 = scalar_lea.sflag [#allocation5], %s858_s28 }
  0x2d   : > { %236 = vmatpush.msra.mxu0 %v200_v1  ;;  %604 = vmatpush.msra.mxu1 %v200_v1  ;;  %v263_v14 = vld [vmem:[%s1006_s1] sm:$0xff]  ;;  %v264_v17 = vld [vmem:[%s1006_s1 + $0x8] sm:$0xff]  ;;  %v265_v20 = vld [vmem:[%s1006_s1 + $0x10] sm:$0xff]  ;;  %s470_s5 = scalar_lea.hbm %s1008_s3, %s602_s30  ;;  %s471_s7 = sshll.u32 %s909_s27, 4  ;;  %s472_s7 = int_to_ptr.vmem [resolvable:$true] %s471_s7 }
  0x2e   : > { %553 = vmatmul.msk.f32.vlgmr.msra.gmra.mxu0 %vm202_vm0, %v194_v2  ;;  %558 = vmatmul.msk.f32.vlgmr.msra.gmra.mxu1 %vm202_vm0, %v199_v3  ;;  %v266_v23 = vld [vmem:[%s1006_s1 + $0x18] sm:$0xff]  ;;  %s473_s8 = sshll.u32 %s470_s5, 4  ;;  %s709_s17 = scalar_lea.hbm %s1008_s3, 384  ;;  %s474_s8 = int_to_ptr.hbm [resolvable:$true] %s473_s8 }
  0x2f   : > { %s703_s16 = sshra.s32 %s474_s8, 4  ;;  %s704_s16 = int_to_ptr.hbm [resolvable:$true] %s703_s16 }
  0x30   : > { %s705_s9 = scalar_lea.hbm %s704_s16, 192  ;;  %p710_p3 = scmp.lt.s32.totalorder %s704_s16, %s1008_s3 }
  0x31   : > { %p706_p6 = scmp.ne.s32.totalorder %s704_s16, %s705_s9  ;;  %p711_p4 = scmp.lt.s32.totalorder %s709_s17, %s705_s9 }
  0x33   : > { %p707_p13 = pnand %p706_p6, %p828_p11  ;;  %p712_p5 = por %p711_p4, %p710_p3 }
  0x35   : > { %p708_p2 = pneg %p707_p13 }
  0x36   : > { %554 = vmatmul.msk.f32.gmra.mxu0 %vm202_vm0, %v195_v4 }
  0x37   : > { %p713_p7 = pnand %p712_p5, %p708_p2 }
  0x3e   : > { %555 = vmatmul.msk.f32.gmra.mxu0 %vm202_vm0, %v196_v5 }
  0x46   : > { %556 = vmatmul.msk.f32.gmra.mxu0 %vm202_vm0, %v197_v6 }
  0x4e   : > { %557 = vmatmul.msk.f32.gmra.mxu0 %vm202_vm0, %v198_v7 }
  0xab   : > { %v238_v8 = vpop.f32.mrf.mxu0  ;;  %v253_v9 = vpop.f32.mrf.mxu1 }
  0xac   : > { %257 = vst.msk [vmem:[#allocation2] sm:$0xff] %vm256_vm1, %v238_v8 }
  0xad   : > { %262 = vst.msk [vmem:[#allocation2 + $0x28] sm:$0xff] %vm256_vm1, %v253_v9 }
  0xb3   : > { %v241_v10 = vpop.f32.mrf.mxu0  ;;  %v267_v15 = vld [vmem:[#allocation2] sm:$0xff] }
  0xb4   : > { %258 = vst.msk [vmem:[#allocation2 + $0x8] sm:$0xff] %vm256_vm1, %v241_v10  ;;  %v399_v11 = vld [vmem:[#allocation2 + $0x28] sm:$0xff] }
  0xb5   : > { %414 = vmatpush.msra.mxu3 %v399_v11 }
  0xbb   : > { %v244_v12 = vpop.f32.mrf.mxu0  ;;  %v268_v13 = vld [vmem:[#allocation2 + $0x8] sm:$0xff] }
  0xbc   : > { %259 = vst.msk [vmem:[#allocation2 + $0x10] sm:$0xff] %vm256_vm1, %v244_v12  ;;  %295 = vmatpush.msrb.mxu1 %v268_v13 }
  0xbe   : > { %296 = vmatpush.msrb.mxu1 %v267_v15 }
  0xbf   : > { %559 = vmatmul.msk.f32.vlgmr.msrb.gmra.mxu1 %vm202_vm0, %v263_v14 }
  0xc3   : > { %v247_v16 = vpop.f32.mrf.mxu0  ;;  %v338_v21 = vld [vmem:[#allocation2 + $0x10] sm:$0xff] }
  0xc4   : > { %260 = vst.msk [vmem:[#allocation2 + $0x18] sm:$0xff] %vm256_vm1, %v247_v16 }
  0xc7   : > { %560 = vmatmul.msk.f32.gmra.mxu1 %vm202_vm0, %v264_v17 }
  0xcb   : > { %v339_v18 = vld [vmem:[#allocation2 + $0x18] sm:$0xff]  ;;  %v250_v19 = vpop.f32.mrf.mxu0 }
  0xcc   : > { %354 = vmatpush.msra.mxu2 %v339_v18  ;;  %261 = vst.msk [vmem:[#allocation2 + $0x20] sm:$0xff] %vm256_vm1, %v250_v19 }
  0xce   : > { %355 = vmatpush.msra.mxu2 %v338_v21 }
  0xcf   : > { %569 = vmatmul.msk.f32.vlgmr.msra.gmra.mxu2 %vm202_vm0, %v263_v14  ;;  %561 = vmatmul.msk.f32.gmra.mxu1 %vm202_vm0, %v265_v20 }
  0xd3   : > { %v398_v22 = vld [vmem:[#allocation2 + $0x20] sm:$0xff] }
  0xd4   : > { %415 = vmatpush.msra.mxu3 %v398_v22 }
  0xd5   : > { %581 = vmatmul.msk.f32.vlgmr.msra.gmra.mxu3 %vm202_vm0, %v263_v14 }
  0xd7   : > { %570 = vmatmul.msk.f32.gmra.mxu2 %vm202_vm0, %v264_v17  ;;  %562 = vmatmul.msk.f32.gmra.mxu1 %vm202_vm0, %v266_v23 }
  0xdd   : > { %582 = vmatmul.msk.f32.gmra.mxu3 %vm202_vm0, %v264_v17 }
  0xdf   : > { %571 = vmatmul.msk.f32.gmra.mxu2 %vm202_vm0, %v265_v20 }
  0xe5   : > { %583 = vmatmul.msk.f32.gmra.mxu3 %vm202_vm0, %v265_v20 }
  0xe7   : > { %572 = vmatmul.msk.f32.gmra.mxu2 %vm202_vm0, %v266_v23 }
  0xed   : > { %584 = vmatmul.msk.f32.gmra.mxu3 %vm202_vm0, %v266_v23 }
 0x13c   : > { %v298_v24 = vpop.f32.mrf.mxu1 }
 0x13d   : > { %310 = vst.msk [vmem:[%s909_s27] sm:$0xff] %vm202_vm0, %v298_v24  ;;  %317 = vrot.lane.b32.xlu0 %v298_v24, %s759_s29 }
 0x144   : > { %v301_v25 = vpop.f32.mrf.mxu1 }
 0x145   : > { %311 = vst.msk [vmem:[%s909_s27 + $0x8] sm:$0xff] %vm202_vm0, %v301_v25  ;;  %319 = vrot.lane.b32.xlu0 %v301_v25, %s759_s29 }
 0x14c   : > { %v304_v26 = vpop.f32.mrf.mxu1 }
 0x14d   : > { %563 = vst.msk [vmem:[%s909_s27 + $0x10] sm:$0xff] %vm202_vm0, %v304_v26  ;;  %328 = vrot.lane.b32.xlu1 %v304_v26, %s759_s29 }
 0x152   : > { %v357_v27 = vpop.f32.mrf.mxu2 }
 0x153   : > { %573 = vst.msk [vmem:[%s909_s27 + $0x40] sm:$0xff] %vm202_vm0, %v357_v27  ;;  %377 = vrot.lane.b32.xlu2 %v357_v27, %s759_s29 }
 0x154   : > { %v307_v28 = vpop.f32.mrf.mxu1 }
 0x155   : > { %564 = vst.msk [vmem:[%s909_s27 + $0x18] sm:$0xff] %vm202_vm0, %v307_v28  ;;  %330 = vrot.lane.b32.xlu1 %v307_v28, %s759_s29 }
 0x158   : > { %v417_v29 = vpop.f32.mrf.mxu3 }
 0x159   : > { %585 = vst.msk [vmem:[%s909_s27 + $0x80] sm:$0xff] %vm202_vm0, %v417_v29 }
 0x15a   : > { %v360_v30 = vpop.f32.mrf.mxu2 }
 0x15b   : > { %574 = vst.msk [vmem:[%s909_s27 + $0x48] sm:$0xff] %vm202_vm0, %v360_v30  ;;  %437 = vrot.lane.b32.xlu2 %v417_v29, %s759_s29 }
 0x160   : > { %v420_v31 = vpop.f32.mrf.mxu3 }
 0x161   : > { %586 = vst.msk [vmem:[%s909_s27 + $0x88] sm:$0xff] %vm202_vm0, %v420_v31 }
 0x162   : > { %v363_v32 = vpop.f32.mrf.mxu2 }
 0x163   : > { %575 = vst.msk [vmem:[%s909_s27 + $0x50] sm:$0xff] %vm202_vm0, %v363_v32  ;;  %388 = vrot.lane.b32.xlu0 %v363_v32, %s759_s29  ;;  %379 = vrot.lane.b32.xlu2 %v360_v30, %s759_s29 }
 0x168   : > { %v423_v33 = vpop.f32.mrf.mxu3 }
 0x169   : > { %587 = vst.msk [vmem:[%s909_s27 + $0x90] sm:$0xff] %vm202_vm0, %v423_v33 }
 0x16a   : > { %v366_v34 = vpop.f32.mrf.mxu2 }
 0x16b   : > { %576 = vst.msk [vmem:[%s909_s27 + $0x58] sm:$0xff] %vm202_vm0, %v366_v34  ;;  %390 = vrot.lane.b32.xlu1 %v366_v34, %s759_s29  ;;  %439 = vrot.lane.b32.xlu0 %v420_v31, %s759_s29 }
 0x170   : > { %v426_v35 = vpop.f32.mrf.mxu3 }
 0x171   : > { %588 = vst.msk [vmem:[%s909_s27 + $0x98] sm:$0xff] %vm202_vm0, %v426_v35  ;;  %450 = vrot.lane.b32.xlu2 %v426_v35, %s759_s29 }
 0x173   : > { %448 = vrot.lane.b32.xlu1 %v423_v33, %s759_s29 }
 0x1ad   : > { %v378_v36 = vpop.permute.xlu2 %377 }
 0x1ae   : > { %577 = vst.msk [vmem:[%s909_s27 + $0x60] sm:$0xff] %vm202_vm0, %v378_v36 }
 0x1af   : > { %v318_v37 = vpop.permute.xlu0 %317 }
 0x1b0   : > { %565 = vst.msk [vmem:[%s909_s27 + $0x20] sm:$0xff] %vm202_vm0, %v318_v37 }
 0x1b5   : > { %v438_v38 = vpop.permute.xlu2 %437 }
 0x1b6   : > { %589 = vst.msk [vmem:[%s909_s27 + $0xa0] sm:$0xff] %vm202_vm0, %v438_v38 }
 0x1b7   : > { %v320_v39 = vpop.permute.xlu0 %319 }
 0x1b8   : > { %566 = vst.msk [vmem:[%s909_s27 + $0x28] sm:$0xff] %vm202_vm0, %v320_v39 }
 0x1bd   : > { %v380_v40 = vpop.permute.xlu2 %379 }
 0x1be   : > { %578 = vst.msk [vmem:[%s909_s27 + $0x68] sm:$0xff] %vm202_vm0, %v380_v40 }
 0x1bf   : > { %v329_v41 = vpop.permute.xlu1 %328 }
 0x1c0   : > { %567 = vst.msk [vmem:[%s909_s27 + $0x30] sm:$0xff] %vm202_vm0, %v329_v41 }
 0x1c7   : > { %v331_v42 = vpop.permute.xlu1 %330 }
 0x1c8   : > { %568 = vst.msk [vmem:[%s909_s27 + $0x38] sm:$0xff] %vm202_vm0, %v331_v42 }
 0x1cb   : > { %v451_v43 = vpop.permute.xlu2 %450 }
 0x1cc   : > { %592 = vst.msk [vmem:[%s909_s27 + $0xb8] sm:$0xff] %vm202_vm0, %v451_v43 }
 0x1d5   : > { %v389_v44 = vpop.permute.xlu0 %388 }
 0x1d6   : > { %579 = vst.msk [vmem:[%s909_s27 + $0x70] sm:$0xff] %vm202_vm0, %v389_v44 }
 0x1dd   : > { %v391_v45 = vpop.permute.xlu1 %390  ;;  %v440_v46 = vpop.permute.xlu0 %439 }
 0x1de   : > { %580 = vst.msk [vmem:[%s909_s27 + $0x78] sm:$0xff] %vm202_vm0, %v391_v45 }
 0x1df   : > { %590 = vst.msk [vmem:[%s909_s27 + $0xa8] sm:$0xff] %vm202_vm0, %v440_v46 }
 0x1e5   : > { %v449_v47 = vpop.permute.xlu1 %448 }
 0x1e6   : > { %591 = vst.msk [vmem:[%s909_s27 + $0xb0] sm:$0xff] %vm202_vm0, %v449_v47 }
 0x1e7   : > { %716 = shalt.err (!%p713_p7)
}
 0x1e8   : > { %s760_s28 = smov 128   ;;  %s761_s26 = smov 8  }
 0x1e9   : > { %610 = dma.vmem_to_hbm [thread:$0]  (%p828_p11), %s472_s7, 3072, %s474_s8, %s458_s22, %s760_s28, %s760_s28, %s761_s26  }
 0x1ea PF: > { %s488_s25 = sand.u32 1, %s743_s12   ;;  %p617_p8 = pnand %p549_p9, %p832_p12 }
 0x1eb   : > { %s489_s27 = scalar_lea.sflag [#allocation5], %s488_s25 }
 0x1ec   : > { %p618_p10 = pneg %p617_p8 }
 0x1ee   : > { %738 = dma.done.wait (%p618_p10), %s489_s27, 3072  }
 0x1ef   : > { %740 = vsyncadd (%p618_p10), %s489_s27, 4294964224  ;;  %p16_p0 = scmp.ge.s32.totalorder %s807_s18, 4   ;;  %s1013_s12 = smov %s747_s13 }
 0x1f0   : > { %s1014_s13 = smov %s751_s14  ;;  %s1015_s14 = smov %s819_s21 }
 0x1f1   : > { %s1016_s15 = smov %s807_s18  ;;  %18 = sbr.rel (!%p16_p0) target bundleno = 5 (0x5), region = 90 }
 0x1f6   :  { %495 = vsyncpa [#allocation4], 1 }
 0x1f7   :  { %497 = vsyncpa [#allocation4 + $0x1], 1 }
 0x1f8   :  { %498 = vsyncpa [#allocation5], 1 }
 0x1f9   :  { %500 = vsyncpa [#allocation5 + $0x1], 1 }

</bundles_post_ra>
